<compile_context>
chip_gen: v5e
topology: v5e:2x2
jax: 0.10.0
libtpu: 0.0.40
codegen_flags: <defaults>
</compile_context>

<pallas_src>
import functools

import jax
import jax.numpy as jnp
from jax.experimental import pallas as pl
from jax.experimental.pallas import tpu as pltpu


# ---------------------------------------------------------------------------
# Pass 1: global-average-pool sum  ->  1x1 conv  ->  sigmoid  (per batch elem)
# ---------------------------------------------------------------------------
def _pool_conv_kernel(x_ref, w_ref, b_ref, s_ref, acc_ref, *, inv_hw, thw):
    # x_ref : (1, C, THW)   input tile, native dtype
    # w_ref : (C, C)        conv weight (out_ch, in_ch)
    # b_ref : (C, 1)        conv bias
    # s_ref : (1, C, 1)     f32 sigmoid scale (written only on last HW step)
    # acc_ref: (C, 128) f32 VMEM scratch: VPU partial sums across the HW sweep
    k = pl.program_id(1)

    @pl.when(k == 0)
    def _():
        acc_ref[...] = jnp.zeros_like(acc_ref)

    # Two-stage reduction: sum 128-lane chunks with plain VPU adds (f32
    # accumulation only for the long sum; the tile itself is never upcast
    # and stored back).  THW is always a multiple of 128 by construction.
    partial = acc_ref[...]
    for c in range(thw // 128):                       # short static unroll
        partial = partial + x_ref[0, :, c * 128:(c + 1) * 128].astype(jnp.float32)
    acc_ref[...] = partial

    @pl.when(k == pl.num_programs(1) - 1)
    def _():
        # Single cross-lane (XLU) reduce, once per batch element.
        pooled = jnp.sum(acc_ref[...], axis=1, keepdims=True) * inv_hw   # (C, 1)
        # 1x1 conv == channel matmul + bias.  O(C^2), runs once per batch
        # element outside the streaming loop, so the narrow RHS is off the
        # hot path (and avoids any small-shape transpose lowering risk).
        s = jnp.dot(w_ref[...].astype(jnp.float32), pooled,
                    preferred_element_type=jnp.float32)
        s = s + b_ref[...].astype(jnp.float32)
        s_ref[0] = jax.nn.sigmoid(s)                                     # (C, 1)


# ---------------------------------------------------------------------------
# Pass 2: broadcast multiply  out = sigmoid_scale * x   (pure streaming)
# ---------------------------------------------------------------------------
def _scale_kernel(x_ref, s_ref, o_ref):
    # x_ref/o_ref: (1, C, THW) native dtype;  s_ref: (1, C, 1) f32
    x = x_ref[0]                                   # keep native dtype (bf16 ok)
    o_ref[0] = x * s_ref[0].astype(x.dtype)        # lane-broadcast of per-ch scale


# ---------------------------------------------------------------------------
# Wrapper
# ---------------------------------------------------------------------------
def _round_up(v, m):
    return ((v + m - 1) // m) * m


def attention_refinement(x_nchw, weight, bias, *,
                         max_lane_tile=2048,
                         block_bytes_budget=2 * 1024 * 1024):
    """x_nchw: (N, C, H, W); weight: (C, C) (squeezed 1x1 conv); bias: (C,)."""
    N, C, H, W = x_nchw.shape
    HW = H * W
    dtype = x_nchw.dtype
    itemsize = jnp.dtype(dtype).itemsize

    # ---- pick a lane-dense HW tile (multiple of 128, bounded VMEM) --------
    hw128 = _round_up(HW, 128)
    lanes_budget = max(128, (block_bytes_budget // (C * itemsize)) // 128 * 128)
    max_thw = int(min(max_lane_tile, lanes_budget, hw128))
    n_hw = pl.cdiv(hw128, max_thw)
    thw = _round_up(pl.cdiv(hw128, n_hw), 128)     # minimizes padding
    hw_pad = thw * n_hw

    x3 = x_nchw.reshape(N, C, HW)
    if hw_pad != HW:
        # Zero padding: does not bias the pooled sum (divide by true HW below).
        x3 = jnp.pad(x3, ((0, 0), (0, 0), (0, hw_pad - HW)))

    w = weight.reshape(C, C)
    b2 = bias.reshape(C, 1)

    # ---- pass 1: pooled mean -> conv -> sigmoid  => per-channel scale ------
    scale = pl.pallas_call(
        functools.partial(_pool_conv_kernel, inv_hw=1.0 / HW, thw=thw),
        out_shape=jax.ShapeDtypeStruct((N, C, 1), jnp.float32),
        grid_spec=pltpu.PrefetchScalarGridSpec(
            num_scalar_prefetch=0,
            grid=(N, n_hw),                                   # reduction axis last
            in_specs=[
                pl.BlockSpec((1, C, thw), lambda n, k: (n, 0, k)),
                pl.BlockSpec((C, C), lambda n, k: (0, 0)),
                pl.BlockSpec((C, 1), lambda n, k: (0, 0)),
            ],
            out_specs=pl.BlockSpec((1, C, 1), lambda n, k: (n, 0, 0)),
            scratch_shapes=[pltpu.VMEM((C, 128), jnp.float32)],
        ),
        compiler_params=pltpu.CompilerParams(
            dimension_semantics=("parallel", "arbitrary")),
        cost_estimate=pl.CostEstimate(
            flops=int(N * C * hw_pad + 2 * N * C * C),
            transcendentals=int(N * C),
            bytes_accessed=int(N * C * hw_pad * itemsize + C * C * 4 + N * C * 4)),
    )(x3, w, b2)

    # ---- pass 2: out = scale * x  (streaming, both grid axes parallel) -----
    out3 = pl.pallas_call(
        _scale_kernel,
        out_shape=jax.ShapeDtypeStruct((N, C, hw_pad), dtype),
        grid_spec=pltpu.PrefetchScalarGridSpec(
            num_scalar_prefetch=0,
            grid=(N, n_hw),
            in_specs=[
                pl.BlockSpec((1, C, thw), lambda n, k: (n, 0, k)),
                pl.BlockSpec((1, C, 1), lambda n, k: (n, 0, 0)),
            ],
            out_specs=pl.BlockSpec((1, C, thw), lambda n, k: (n, 0, k)),
        ),
        compiler_params=pltpu.CompilerParams(
            dimension_semantics=("parallel", "parallel")),
        cost_estimate=pl.CostEstimate(
            flops=int(N * C * hw_pad),
            transcendentals=0,
            bytes_accessed=int(2 * N * C * hw_pad * itemsize + N * C * 4)),
    )(x3, scale)

    if hw_pad != HW:
        out3 = out3[:, :, :HW]
    return out3.reshape(N, C, H, W)


# ---------------------------------------------------------------------------
# Pure-JAX reference mirroring the PyTorch forward.
# ---------------------------------------------------------------------------
def reference(x_nchw, weight, bias):
    xf = x_nchw.astype(jnp.float32)
    pooled = jnp.mean(xf, axis=(2, 3))                               # (N, C)
    conv = pooled @ weight.astype(jnp.float32).T + bias.astype(jnp.float32)
    scale = jax.nn.sigmoid(conv)[:, :, None, None]                   # (N, C, 1, 1)
    return scale * xf


if __name__ == "__main__":
    key = jax.random.PRNGKey(0)

    def run_case(idx, N, C, H, W, dtype, atol, rtol):
        k = jax.random.fold_in(key, idx)
        kx, kw, kb = jax.random.split(k, 3)
        x = jax.random.normal(kx, (N, C, H, W), dtype=jnp.float32).astype(dtype)
        weight = jax.random.normal(kw, (C, C), dtype=jnp.float32) * 0.1
        bias = jax.random.normal(kb, (C,), dtype=jnp.float32) * 0.1

        out = attention_refinement(x, weight, bias)
        out = jax.block_until_ready(out)
        ref = reference(x, weight, bias)

        assert out.shape == (N, C, H, W), f"case {idx}: bad shape {out.shape}"
        assert jnp.allclose(out.astype(jnp.float32), ref, atol=atol, rtol=rtol), (
            f"case {idx}: mismatch")

    # base case (module-consistent small shapes)
    run_case(0, 2, 4, 16, 16, jnp.float32, 1e-5, 1e-5)
    # HW not a multiple of 128 -> exercises the zero-padding path
    run_case(1, 1, 8, 20, 20, jnp.float32, 1e-5, 1e-5)
    # bf16 input -> native-dtype multiply, f32 pooled accumulation
    run_case(2, 2, 4, 16, 16, jnp.bfloat16, 2e-2, 2e-2)

    print("KERNEL_OK")
</pallas_src>

<mosaic_0001>
module attributes {stable_mosaic.version = 11 : i64} {
  func.func @_pool_conv_kernel(%arg0: i32, %arg1: i32, %arg2: memref<1x4x256xf32, #tpu.memory_space<vmem>>, %arg3: memref<4x4xf32, #tpu.memory_space<vmem>>, %arg4: memref<4x1xf32, #tpu.memory_space<vmem>>, %arg5: memref<1x4x1xf32, #tpu.memory_space<vmem>>, %arg6: memref<4x128xf32, #tpu.memory_space<vmem>>) attributes {dimension_semantics = [#tpu.dimension_semantics<parallel>, #tpu.dimension_semantics<arbitrary>], iteration_bounds = array<i64: 2, 1>, scalar_prefetch = 0 : i64, scratch_operands = 1 : i64, tpu.core_type = #tpu.core_type<tc>, window_params = [{transform_indices = @transform_0, window_bounds = array<i64: 1, 4, 256>}, {pipeline_mode = #tpu.pipeline_mode<synchronous>, transform_indices = @transform_1, window_bounds = array<i64: 4, 4>}, {pipeline_mode = #tpu.pipeline_mode<synchronous>, transform_indices = @transform_2, window_bounds = array<i64: 4, 1>}, {transform_indices = @transform_3, window_bounds = array<i64: 1, 4, 1>}]} {
    %c0_i32 = arith.constant 0 : i32
    %0 = arith.cmpi eq, %arg1, %c0_i32 : i32
    %1 = arith.extui %0 : i1 to i32
    %c0_i32_0 = arith.constant 0 : i32
    %2 = arith.cmpi ne, %1, %c0_i32_0 : i32
    scf.if %2 {
      %cst = arith.constant 0.000000e+00 : f32
      %14 = vector.broadcast %cst : f32 to vector<4x128xf32>
      %c0_11 = arith.constant 0 : index
      %c0_12 = arith.constant 0 : index
      %15 = vector.load %arg6[%c0_11, %c0_12] : memref<4x128xf32, #tpu.memory_space<vmem>>, vector<4x128xf32>
      tpu.vector_store %arg6[%c0_11, %c0_12], %14 {strides = array<i32>} : memref<4x128xf32, #tpu.memory_space<vmem>>, vector<4x128xf32>,
    } else {
    }
    %c0 = arith.constant 0 : index
    %c0_1 = arith.constant 0 : index
    %3 = vector.load %arg6[%c0, %c0_1] : memref<4x128xf32, #tpu.memory_space<vmem>>, vector<4x128xf32>
    %c0_2 = arith.constant 0 : index
    %c0_3 = arith.constant 0 : index
    %c0_4 = arith.constant 0 : index
    %4 = vector.load %arg2[%c0_2, %c0_3, %c0_4] : memref<1x4x256xf32, #tpu.memory_space<vmem>>, vector<1x4x128xf32>
    %5 = vector.shape_cast %4 : vector<1x4x128xf32> to vector<4x128xf32>
    %6 = arith.addf %3, %5 : vector<4x128xf32>
    %c0_5 = arith.constant 0 : index
    %c0_6 = arith.constant 0 : index
    %c128 = arith.constant 128 : index
    %7 = vector.load %arg2[%c0_5, %c0_6, %c128] : memref<1x4x256xf32, #tpu.memory_space<vmem>>, vector<1x4x128xf32>
    %8 = vector.shape_cast %7 : vector<1x4x128xf32> to vector<4x128xf32>
    %9 = arith.addf %6, %8 : vector<4x128xf32>
    %c0_7 = arith.constant 0 : index
    %c0_8 = arith.constant 0 : index
    %10 = vector.load %arg6[%c0_7, %c0_8] : memref<4x128xf32, #tpu.memory_space<vmem>>, vector<4x128xf32>
    tpu.vector_store %arg6[%c0_7, %c0_8], %9 {strides = array<i32>} : memref<4x128xf32, #tpu.memory_space<vmem>>, vector<4x128xf32>,
    %c0_i32_9 = arith.constant 0 : i32
    %11 = arith.cmpi eq, %arg1, %c0_i32_9 : i32
    %12 = arith.extui %11 : i1 to i32
    %c0_i32_10 = arith.constant 0 : i32
    %13 = arith.cmpi ne, %12, %c0_i32_10 : i32
    scf.if %13 {
      %c0_11 = arith.constant 0 : index
      %c0_12 = arith.constant 0 : index
      %14 = vector.load %arg6[%c0_11, %c0_12] : memref<4x128xf32, #tpu.memory_space<vmem>>, vector<4x128xf32>
      %cst = arith.constant dense<0.000000e+00> : vector<4xf32>
      %15 = vector.multi_reduction <add>, %14, %cst [1] : vector<4x128xf32> to vector<4xf32>
      %16 = vector.shape_cast %15 : vector<4xf32> to vector<4x1xf32>
      %cst_13 = arith.constant 3.906250e-03 : f32
      %17 = vector.broadcast %cst_13 : f32 to vector<4x1xf32>
      %18 = arith.mulf %16, %17 : vector<4x1xf32>
      %c0_14 = arith.constant 0 : index
      %c0_15 = arith.constant 0 : index
      %19 = vector.load %arg3[%c0_14, %c0_15] : memref<4x4xf32, #tpu.memory_space<vmem>>, vector<4x4xf32>
      %cst_16 = arith.constant dense<0.000000e+00> : vector<4x1xf32>
      %20 = tpu.matmul %19, %18, %cst_16 {dimension_numbers = #tpu.dot_dimension_numbers<[1], [0], [0], [1], [0, 0, 1, 1], [], []>} : vector<4x4xf32>, vector<4x1xf32>, vector<4x1xf32> -> vector<4x1xf32>
      %c0_17 = arith.constant 0 : index
      %c0_18 = arith.constant 0 : index
      %21 = vector.load %arg4[%c0_17, %c0_18] : memref<4x1xf32, #tpu.memory_space<vmem>>, vector<4x1xf32>
      %22 = arith.addf %20, %21 : vector<4x1xf32>
      %23 = arith.negf %22 : vector<4x1xf32>
      %24 = math.exp %23 : vector<4x1xf32>
      %cst_19 = arith.constant 1.000000e+00 : f32
      %25 = vector.broadcast %cst_19 : f32 to vector<4x1xf32>
      %26 = arith.addf %25, %24 : vector<4x1xf32>
      %27 = arith.divf %25, %26 : vector<4x1xf32>
      %c0_20 = arith.constant 0 : index
      %c0_21 = arith.constant 0 : index
      %c0_22 = arith.constant 0 : index
      %28 = vector.load %arg5[%c0_20, %c0_21, %c0_22] : memref<1x4x1xf32, #tpu.memory_space<vmem>>, vector<1x4x1xf32>
      %29 = vector.shape_cast %28 : vector<1x4x1xf32> to vector<4x1xf32>
      %30 = vector.shape_cast %27 : vector<4x1xf32> to vector<1x4x1xf32>
      tpu.vector_store %arg5[%c0_20, %c0_21, %c0_22], %30 {strides = array<i32>} : memref<1x4x1xf32, #tpu.memory_space<vmem>>, vector<1x4x1xf32>,
    } else {
    }
    return
  }
  func.func @transform_0(%arg0: i32, %arg1: i32) -> (i32, i32, i32) {
    %c0_i32 = arith.constant 0 : i32
    %c0_i32_0 = arith.constant 0 : i32
    return %arg0, %c0_i32, %arg1 : i32, i32, i32
  }
  func.func @transform_1(%arg0: i32, %arg1: i32) -> (i32, i32) {
    %c0_i32 = arith.constant 0 : i32
    %c0_i32_0 = arith.constant 0 : i32
    %c0_i32_1 = arith.constant 0 : i32
    return %c0_i32, %c0_i32_0 : i32, i32
  }
  func.func @transform_2(%arg0: i32, %arg1: i32) -> (i32, i32) {
    %c0_i32 = arith.constant 0 : i32
    %c0_i32_0 = arith.constant 0 : i32
    %c0_i32_1 = arith.constant 0 : i32
    return %c0_i32, %c0_i32_0 : i32, i32
  }
  func.func @transform_3(%arg0: i32, %arg1: i32) -> (i32, i32, i32) {
    %c0_i32 = arith.constant 0 : i32
    %c0_i32_0 = arith.constant 0 : i32
    %c0_i32_1 = arith.constant 0 : i32
    return %arg0, %c0_i32, %c0_i32_0 : i32, i32, i32
  }
}

</mosaic_0001>

<bundles_post_ra>
// kernel: tpu_custom_call.1
= control target key start
LH: loop header
LB: loop body
LE: loop exit
PB: predicated region body
PF: predicated region fallthrough
CT: control target
= control target key end

     0   :  { %8 = vsyncpa [#allocation4], 0  ;;  %s625_s0 = inlined_call_operand.hbm [shape: f32[2,4,256], index: 0, kind: input, shape index: {}]   ;;  %s626_s1 = inlined_call_operand.vmem [shape: f32[4,4], index: 1, kind: input, shape index: {}]   ;;  %s627_s2 = inlined_call_operand.vmem [shape: f32[4,1], index: 2, kind: input, shape index: {}]   ;;  %s628_s3 = inlined_call_operand.vmem [shape: f32[2,4,1], index: 3, kind: output, shape index: {}]  }
   0x1   :  { %10 = vsyncpa [#allocation4 + $0x1], 0  ;;  %s531_s12 = smov 0   ;;  %s533_s13 = smov 0  }
   0x2   :  { %s535_s14 = smov 0   ;;  %s537_s15 = smov 0  }
   0x3   :  { %s539_s16 = smov 0   ;;  %s541_s17 = smov 0  }
   0x4 LB: > { %s352_s18 = sadd.s32 4294967295, %s508_s17   ;;  %s28_s19 = sadd.s32 1, %s504_s16  ;;  %s508_s17 = sphi %s541_s17, %s16_s17   ;;  %s504_s16 = sphi %s539_s16, %s635_s16   ;;  %s500_s15 = sphi %s537_s15, %s634_s15   ;;  %s496_s14 = sphi %s535_s14, %s633_s14   ;;  %s492_s13 = sphi %s533_s13, %s632_s13   ;;  %s488_s12 = sphi %s531_s12, %s631_s12  }
   0x5   : > { %p30_p0 = scmp.ge.s32.totalorder %s28_s19, 2  ;;  %s37_s20 = sadd.s32 1, %s496_s14 }
   0x6   : > { %p44_p1 = scmp.ne.s32.totalorder %s496_s14, %s492_s13  ;;  %p45_p2 = scmp.eq.s32.totalorder %s508_s17, 0 }
   0x7   : > { %s637_s19 = smov (%p30_p0, %s28_s19), 0  ;;  %p50_p4 = scmp.ne.s32.totalorder %s492_s13, %s488_s12 }
   0x8   : > { %p567_p3 = por %p45_p2, %p44_p1  ;;  %s32_s22 = ssub.s32 %s504_s16, %s637_s19 }
   0x9   : > { %p51_p5 = scmp.eq.s32.totalorder %s352_s18, 0  ;;  %p35_p6 = scmp.eq.s32.totalorder %s32_s22, 0 }
   0xa   : > { %p374_p8 = scmp.lt.s32.totalorder %s508_s17, 2  ;;  %s148_s25 = sand.u32 1, %s496_s14  }
   0xb   : > { %p574_p7 = por %p51_p5, %p50_p4  ;;  %s367_s26 = sshll.u32 %s504_s16, 3 }
   0xc   : > { %s580_s24 = scalar_select %p35_p6, %s496_s14, %s37_s20  }
   0xd   : > { %s356_s27 = sshll.u32 %s148_s25, 3  ;;  %s159_s30 = scalar_lea.hbm %s625_s0, %s367_s26 }
   0xe   : > { %s161_s4 = sshll.u32 %s159_s30, 4  ;;  %s152_s5 = scalar_lea.vmem [#allocation3], %s356_s27  ;;  %s162_s4 = int_to_ptr.hbm [resolvable:$true] %s161_s4 }
   0xf   : > { %s163_s6 = sshll.u32 %s152_s5, 4  ;;  %p371_p9 = pnand %p374_p8, %p567_p3  ;;  %s164_s6 = int_to_ptr.vmem [resolvable:$true] %s163_s6 }
  0x10   : > { %p359_p10 = scmp.ge.s32.totalorder %s508_s17, 1  ;;  %p168_p11 = scmp.lt.s32.totalorder %s508_s17, 3 }
  0x11   : > { %s149_s7 = scalar_lea.sflag [#allocation4], %s148_s25 }
  0x12   : > { %373 = dma.hbm_to_vmem [thread:$0]  (!%p371_p9), %s162_s4, 128, %s164_s6, %s149_s7  }
  0x13   : > { %p169_p12 = pnand %p359_p10, %p168_p11 }
  0x14   : > { %s174_s8 = sand.u32 (!%p169_p12), 1, %s492_s13  }
  0x15   : > { %172 = sbr.rel (%p169_p12) target bundleno = 325 (0x145), region = 32  ;;  %s360_s9 = sshll.u32 (!%p169_p12), %s174_s8, 3 }
  0x16   : > { %s175_s10 = scalar_lea.sflag (!%p169_p12), [#allocation4], %s174_s8  ;;  %s178_s11 = scalar_lea.vmem (!%p169_p12), [#allocation3], %s360_s9 }
  0x1a   : > { %483 = dma.done.wait (%p574_p7), %s175_s10, 128  }
  0x1b   : > { %485 = vsyncadd (%p574_p7), %s175_s10, 4294967168  ;;  %v510_v0 = vmov 0.0   ;;  %v212_v1 = vld [vmem:[%s178_s11] sm:$0xf]  ;;  %v214_v3 = vld [vmem:[%s178_s11 + $0x4] sm:$0xf] }
  0x1c   : > { %210 = vst [vmem:[#allocation2] sm:$0xf] %v510_v0  ;;  %vm221_vm0 = vcmask 1043456   ;;  %v226_v10 = vld [vmem:[%s626_s1] sm:$0xf]  ;;  %vm228_vm1 = vcmask 31744  }
  0x1d   : > { %v227_v11 = vld [vmem:[%s627_s2] sm:$0xf]  ;;  %p202_p13 = scmp.lt.s32.totalorder %s500_s15, 1  ;;  %vm274_vm5 = vcmask 3072  }
  0x1f   : > { %s639_s15 = smov (!%p202_p13, %s500_s15), 1 }
  0x20   : > { %s361_s22 = sshll.u32 %s639_s15, 2 }
  0x21   : > { %s205_s26 = scalar_lea.vmem %s628_s3, %s361_s22 }
  0x23   : > { %v211_v2 = vld [vmem:[#allocation2] sm:$0xf] }
  0x24   : > { %v213_v4 = vadd.f32 %v212_v1, %v211_v2 }
  0x26   : > { %v215_v5 = vadd.f32 %v214_v3, %v213_v4 }
  0x28   : > { %216 = vst [vmem:[#allocation2] sm:$0xf] %v215_v5 }
  0x2f   : > { %v220_v6 = vld [vmem:[#allocation2] sm:$0xf] }
  0x30   : > { %v222_v7 = vsel %vm221_vm0, %v220_v6, 0.0 }
  0x31   : > { %223 = vadd.xlane.f32.xlu0 %v222_v7 }
  0xa4   : > { %v224_v8 = vpop.xlane.xlu0 %223 }
  0xa5   : > { %v225_v9 = vmul.f32 0.00390625, %v224_v8 }
  0xa7   : > { %362 = vmatpush.msk.msra.mxu0 %vm221_vm0, %v225_v9 }
  0xa8   : > { %363 = vmatmul.msk.f32.vlgmr.msra.gmra.mxu0 %vm228_vm1, %v226_v10 }
 0x125   : > { %v252_v12 = vpop.f32.mrf.mxu0 }
 0x126   : > { %v253_v13 = vadd.f32 %v252_v12, %v227_v11 }
 0x128   : > { %v364_v14 = vmul.f32 -1.442695, %v253_v13 }
 0x12a   : > { %424 = vpow2.f32 %v364_v14 }
 0x130   : > { %v425_v15 = vpop.eup %424 }
 0x131   : > { %v258_v16 = vadd.f32 1.0, %v425_v15 }
 0x133   : > { %426 = vrcp.f32 %v258_v16  ;;  %v270_v20 = vand.u32 2147483648, %v258_v16  ;;  %v268_v22 = vand.u32 2147483647, %v258_v16  ;;  %vm264_vm3 = vweird.f32 %v258_v16 }
 0x135   : > { %v271_v24 = vor.u32 1.1754944e-38, %v270_v20  ;;  %vm269_vm6 = vcmp.eq.f32.partialorder %v268_v22, 8.507059e+37 }
 0x139   : > { %v427_v17 = vpop.eup %426 }
 0x13a   : > { %v260_v18 = vmul.f32 %v427_v17, %v258_v16  ;;  %vm265_vm2 = vweird.f32 %v427_v17 }
 0x13b   : > { %vm266_vm4 = vmor %vm264_vm3, %vm265_vm2 }
 0x13c   : > { %v261_v19 = vsub.f32 1.0, %v260_v18 }
 0x13e   : > { %v262_v21 = vmul.f32 %v427_v17, %v261_v19 }
 0x140   : > { %v263_v23 = vadd.f32 %v427_v17, %v262_v21 }
 0x142   : > { %v267_v25 = vsel %vm266_vm4, %v427_v17, %v263_v23 }
 0x143   : > { %v272_v26 = vsel %vm269_vm6, %v271_v24, %v267_v25 }
 0x144   : > { %275 = vst.msk [vmem:[%s205_s26] sm:$0xf] %vm274_vm5, %v272_v26 }
 0x145 PF: > { %s16_s17 = sadd.s32 1, %s508_s17   ;;  %s631_s12 = smov %s492_s13 }
 0x146   : > { %p13_p0 = scmp.ge.s32.totalorder %s16_s17, 4   ;;  %s632_s13 = smov %s496_s14 }
 0x147   : > { %s633_s14 = smov %s580_s24  ;;  %s634_s15 = smov %s504_s16 }
 0x148   : > { %s635_s16 = smov %s637_s19  ;;  %15 = sbr.rel (!%p13_p0) target bundleno = 4 (0x4), region = 80 }
 0x14d   :  { %295 = vsyncpa [#allocation4], 1 }
 0x14e   :  { %297 = vsyncpa [#allocation4 + $0x1], 1 }

</bundles_post_ra>
